<compile_context>
chip_gen: v6e
topology: v6e:2x2x1
jax: 0.10.0
libtpu: 0.0.40
codegen_flags: <defaults>
</compile_context>

<pallas_src>
import jax
import jax.numpy as jnp
from jax.experimental import pallas as pl
from jax.experimental.pallas import tpu as pltpu


# ----------------------------------------------------------------------------
# Glue: 1-D bilinear-resize matrix matching torch.nn.functional.interpolate(
#   mode='bilinear', align_corners=False, antialias=False) along one axis.
# ----------------------------------------------------------------------------
def _bilinear_resize_matrix(out_size: int, in_size: int) -> jnp.ndarray:
    scale = in_size / out_size
    dst = jnp.arange(out_size, dtype=jnp.float32)
    src = (dst + 0.5) * scale - 0.5
    src = jnp.maximum(src, 0.0)                      # PyTorch clamps negative side
    i0 = jnp.floor(src).astype(jnp.int32)
    i0 = jnp.clip(i0, 0, in_size - 1)
    i1 = jnp.minimum(i0 + 1, in_size - 1)
    w1 = src - i0.astype(jnp.float32)
    w0 = 1.0 - w1
    m = (jax.nn.one_hot(i0, in_size, dtype=jnp.float32) * w0[:, None]
         + jax.nn.one_hot(i1, in_size, dtype=jnp.float32) * w1[:, None])
    return m                                          # (out_size, in_size)


def _fold_conv_bn(branch):
    """Fold 1x1 conv (bias disabled: bias='auto' with a norm) + eval-mode BN
    into a (Cout, Cin) weight and (Cout,) bias (channels-first)."""
    w = branch["conv_w"][:, :, 0, 0]                                  # (Cout, Cin)
    scale = branch["bn_gamma"] * jax.lax.rsqrt(branch["bn_var"] + branch["bn_eps"])
    w_folded = w * scale[:, None]                                     # (Cout, Cin)
    b_folded = branch["bn_beta"] - branch["bn_mean"] * scale          # (Cout,)
    return w_folded.astype(jnp.float32), b_folded.astype(jnp.float32)


def _pick_tile_h(H: int, W: int, max_tile_positions: int) -> int:
    """Pick TH (output rows per grid step): TH | H, TH % 8 == 0 and
    (TH * W) % 128 == 0 so the spatial tile is lane-dense; fall back to the
    full image (block dims equal to the array dims) if no such tile exists."""
    best = None
    for th in range(8, H, 8):
        if H % th != 0:
            continue
        if (th * W) % 128 != 0:
            continue
        if th * W > max_tile_positions:
            continue
        best = th
    return best if best is not None else H


# ----------------------------------------------------------------------------
# Pallas kernel: one (batch, row-tile) step of the fused block.
# Ref shapes (leading batch dims squeezed away by the BlockSpecs):
#   xl_ref   (Cin, TH*W)     high-res input tile, channels-first, flattened
#   xh_ref   (Cin, Hh, Wh)   low-res input (full image)
#   wlt_ref  (Cout, Cin)     folded conv+BN weight, fuse_l
#   wht_ref  (Cout, Cin)     folded conv+BN weight, fuse_h
#   bias_ref (Cout, 1)       combined fuse_l + fuse_h bias (f32)
#   mh_ref   (TH, Hh)        height-resize rows for this tile
#   mwt_ref  (Wh, W)         width-resize matrix (transposed)
#   out_ref  (Cout, TH*W)
# ----------------------------------------------------------------------------
def _fuse_kernel(xl_ref, xh_ref, wlt_ref, wht_ref, bias_ref, mh_ref, mwt_ref,
                 out_ref):
    cin, hh, whs = xh_ref.shape
    th = mh_ref.shape[0]
    ws = mwt_ref.shape[1]
    cdt = wlt_ref.dtype                               # MXU operand dtype (bf16/f32)

    # fuse_l branch: 1x1 conv + folded BN; lane axis = spatial tile (>=128).
    feat_l = jnp.dot(wlt_ref[...], xl_ref[...],
                     preferred_element_type=jnp.float32)              # (Cout, TH*W)

    # fuse_h branch: separable bilinear upsample (height, then width) applied
    # to the Cin-channel input, then the 1x1 conv at full resolution.
    xh = xh_ref[...]                                                  # (Cin, Hh, Wh)
    mh_b = jnp.broadcast_to(mh_ref[...][None, :, :], (cin, th, hh))
    t = jnp.einsum("chy,cyx->chx", mh_b, xh,
                   preferred_element_type=jnp.float32)                # (Cin, TH, Wh)
    mw_b = jnp.broadcast_to(mwt_ref[...][None, :, :], (cin, whs, ws))
    t = jnp.einsum("chx,cxw->chw", t.astype(cdt), mw_b,
                   preferred_element_type=jnp.float32)                # (Cin, TH, W)
    # Flatten the (TH, W) tile onto the lane axis (VMEM relayout/copy, small).
    up = t.reshape(cin, th * ws).astype(cdt)                          # (Cin, TH*W)
    feat_h = jnp.dot(wht_ref[...], up,
                     preferred_element_type=jnp.float32)              # (Cout, TH*W)

    # Combined bias: resize rows sum to 1, so bh can be added after the
    # upsample together with bl.
    out_ref[...] = (feat_l + feat_h + bias_ref[...]).astype(out_ref.dtype)


def fuse_block_sum(x_l, x_h, params, *, compute_dtype=jnp.bfloat16,
                   max_tile_positions=2048):
    """x_l: (B, Cin, H, W), x_h: (B, Cin, Hh, Wh) -> (B, Cout, H, W)."""
    B, Cin, H, W = x_l.shape
    Bh, Cin_h, Hh, Wh = x_h.shape
    assert Bh == B and Cin_h == Cin

    w_l, b_l = _fold_conv_bn(params["fuse_l"])        # (Cout, Cin), (Cout,)
    w_h, b_h = _fold_conv_bn(params["fuse_h"])
    Cout = w_l.shape[0]

    bias = (b_l + b_h).reshape(Cout, 1).astype(jnp.float32)

    mh = _bilinear_resize_matrix(H, Hh).astype(compute_dtype)         # (H, Hh)
    mwt = _bilinear_resize_matrix(W, Wh).T.astype(compute_dtype)      # (Wh, W)

    # Channels-first, spatially flattened high-res input (free reshape of NCHW).
    xl = x_l.reshape(B, Cin, H * W).astype(compute_dtype)
    xh = x_h.astype(compute_dtype)                                    # (B, Cin, Hh, Wh)
    wlt = w_l.astype(compute_dtype)
    wht = w_h.astype(compute_dtype)

    TH = _pick_tile_h(H, W, max_tile_positions)
    grid = (B, H // TH)

    # Per-step VMEM is tiny (tile + weights + small resize matrices), so the
    # default scoped VMEM limit is ample on v5e / v6e / v7x.
    out_flat = pl.pallas_call(
        _fuse_kernel,
        out_shape=jax.ShapeDtypeStruct((B, Cout, H * W), x_l.dtype),
        grid_spec=pltpu.PrefetchScalarGridSpec(
            num_scalar_prefetch=0,
            grid=grid,
            in_specs=[
                # None marks the batch dim as squeezed out of the kernel Ref.
                pl.BlockSpec((None, Cin, TH * W), lambda b, p: (b, 0, p)),
                pl.BlockSpec((None, Cin, Hh, Wh), lambda b, p: (b, 0, 0, 0)),
                pl.BlockSpec((Cout, Cin), lambda b, p: (0, 0)),
                pl.BlockSpec((Cout, Cin), lambda b, p: (0, 0)),
                pl.BlockSpec((Cout, 1), lambda b, p: (0, 0)),
                pl.BlockSpec((TH, Hh), lambda b, p: (p, 0)),
                pl.BlockSpec((Wh, W), lambda b, p: (0, 0)),
            ],
            out_specs=pl.BlockSpec((None, Cout, TH * W), lambda b, p: (b, 0, p)),
        ),
        compiler_params=pltpu.CompilerParams(
            dimension_semantics=("parallel", "parallel")),
    )(xl, xh, wlt, wht, bias, mh, mwt)

    return out_flat.reshape(B, Cout, H, W)


# ----------------------------------------------------------------------------
# Deterministic parameter initialization (shapes from the module's __init__).
# ----------------------------------------------------------------------------
def init_params(key, inc, outc):
    keys = jax.random.split(key, 10)

    def branch(ks):
        return dict(
            conv_w=jax.random.normal(ks[0], (outc, inc, 1, 1), jnp.float32) * 0.1,
            bn_gamma=jax.random.uniform(ks[1], (outc,), jnp.float32, 0.5, 1.5),
            bn_beta=jax.random.normal(ks[2], (outc,), jnp.float32) * 0.1,
            bn_mean=jax.random.normal(ks[3], (outc,), jnp.float32) * 0.1,
            bn_var=jax.random.uniform(ks[4], (outc,), jnp.float32, 0.5, 1.5),
            bn_eps=jnp.float32(1e-5),
        )

    return dict(fuse_l=branch(keys[:5]), fuse_h=branch(keys[5:]))


def _reference(x_l, x_h, params):
    """Plain-JAX f32 reference matching the PyTorch module (bias added before
    the upsample, conv before resize) to validate the kernel's refactorings."""
    B, Cin, H, W = x_l.shape
    _, _, Hh, Wh = x_h.shape
    w_l, b_l = _fold_conv_bn(params["fuse_l"])
    w_h, b_h = _fold_conv_bn(params["fuse_h"])
    mh = _bilinear_resize_matrix(H, Hh)
    mw = _bilinear_resize_matrix(W, Wh)
    feat_l = jnp.einsum("oc,bchw->bohw", w_l, x_l) + b_l[None, :, None, None]
    feat_h = jnp.einsum("oc,byx...->boyx" .replace("...", ""), w_h,
                        x_h) if False else (
        jnp.einsum("oc,bcyx->boyx", w_h, x_h) + b_h[None, :, None, None])
    up = jnp.einsum("hy,wx,boyx->bohw", mh, mw, feat_h)
    return feat_l + up


if __name__ == "__main__":
    key = jax.random.PRNGKey(0)
    k_xl, k_xh, k_p = jax.random.split(key, 3)

    B, inc, outc = 2, 4, 8
    H, W = 16, 16          # high-resolution (low-level) feature map
    Hh, Wh = 8, 8          # low-resolution (high-level) feature map

    x_l = jax.random.normal(k_xl, (B, inc, H, W), jnp.float32)
    x_h = jax.random.normal(k_xh, (B, inc, Hh, Wh), jnp.float32)
    params = init_params(k_p, inc, outc)

    ref = _reference(x_l, x_h, params)

    # f32 operand path: tight check of the kernel structure / tiling / folding.
    out_f32 = fuse_block_sum(x_l, x_h, params, compute_dtype=jnp.float32)
    jax.block_until_ready(out_f32)
    assert out_f32.shape == (B, outc, H, W)
    assert jnp.allclose(out_f32, ref, rtol=1e-4, atol=1e-4), "f32 kernel mismatch"

    # bf16 operand path (MXU/HBM-friendly on v5e/v6e/v7x), f32 accumulation.
    out_bf16 = fuse_block_sum(x_l, x_h, params, compute_dtype=jnp.bfloat16)
    jax.block_until_ready(out_bf16)
    assert jnp.allclose(out_bf16, ref, rtol=5e-2, atol=5e-2), "bf16 kernel mismatch"

    print("KERNEL_OK")
</pallas_src>

<mosaic_0001>
module attributes {stable_mosaic.version = 11 : i64} {
  func.func @_fuse_kernel(%arg0: i32, %arg1: i32, %arg2: memref<1x4x128xf32, #tpu.memory_space<vmem>>, %arg3: memref<1x4x8x8xf32, #tpu.memory_space<vmem>>, %arg4: memref<8x4xf32, #tpu.memory_space<vmem>>, %arg5: memref<8x4xf32, #tpu.memory_space<vmem>>, %arg6: memref<8x1xf32, #tpu.memory_space<vmem>>, %arg7: memref<8x8xf32, #tpu.memory_space<vmem>>, %arg8: memref<8x16xf32, #tpu.memory_space<vmem>>, %arg9: memref<1x8x128xf32, #tpu.memory_space<vmem>>) attributes {dimension_semantics = [#tpu.dimension_semantics<parallel>, #tpu.dimension_semantics<parallel>], iteration_bounds = array<i64: 2, 2>, scalar_prefetch = 0 : i64, scratch_operands = 0 : i64, tpu.core_type = #tpu.core_type<tc>, window_params = [{transform_indices = @transform_0, window_bounds = array<i64: 1, 4, 128>}, {transform_indices = @transform_1, window_bounds = array<i64: 1, 4, 8, 8>}, {pipeline_mode = #tpu.pipeline_mode<synchronous>, transform_indices = @transform_2, window_bounds = array<i64: 8, 4>}, {pipeline_mode = #tpu.pipeline_mode<synchronous>, transform_indices = @transform_3, window_bounds = array<i64: 8, 4>}, {pipeline_mode = #tpu.pipeline_mode<synchronous>, transform_indices = @transform_4, window_bounds = array<i64: 8, 1>}, {transform_indices = @transform_5, window_bounds = array<i64: 8, 8>}, {pipeline_mode = #tpu.pipeline_mode<synchronous>, transform_indices = @transform_6, window_bounds = array<i64: 8, 16>}, {transform_indices = @transform_7, window_bounds = array<i64: 1, 8, 128>}]} {
    %c0 = arith.constant 0 : index
    %c0_0 = arith.constant 0 : index
    %0 = vector.load %arg4[%c0, %c0_0] : memref<8x4xf32, #tpu.memory_space<vmem>>, vector<8x4xf32>
    %c0_1 = arith.constant 0 : index
    %c0_2 = arith.constant 0 : index
    %c0_3 = arith.constant 0 : index
    %1 = vector.load %arg2[%c0_1, %c0_2, %c0_3] : memref<1x4x128xf32, #tpu.memory_space<vmem>>, vector<1x4x128xf32>
    %2 = vector.shape_cast %1 : vector<1x4x128xf32> to vector<4x128xf32>
    %cst = arith.constant dense<0.000000e+00> : vector<8x128xf32>
    %3 = tpu.matmul %0, %2, %cst {dimension_numbers = #tpu.dot_dimension_numbers<[1], [0], [0], [1], [0, 0, 1, 1], [], []>} : vector<8x4xf32>, vector<4x128xf32>, vector<8x128xf32> -> vector<8x128xf32>
    %c0_4 = arith.constant 0 : index
    %c0_5 = arith.constant 0 : index
    %c0_6 = arith.constant 0 : index
    %c0_7 = arith.constant 0 : index
    %4 = vector.load %arg3[%c0_4, %c0_5, %c0_6, %c0_7] : memref<1x4x8x8xf32, #tpu.memory_space<vmem>>, vector<1x4x8x8xf32>
    %5 = vector.shape_cast %4 : vector<1x4x8x8xf32> to vector<4x8x8xf32>
    %c0_8 = arith.constant 0 : index
    %c0_9 = arith.constant 0 : index
    %6 = vector.load %arg7[%c0_8, %c0_9] : memref<8x8xf32, #tpu.memory_space<vmem>>, vector<8x8xf32>
    %7 = vector.shape_cast %6 : vector<8x8xf32> to vector<1x8x8xf32>
    %8 = vector.shape_cast %7 : vector<1x8x8xf32> to vector<1x8x8xf32>
    %9 = vector.broadcast %8 : vector<1x8x8xf32> to vector<4x8x8xf32>
    "tpu.trace_start"() <{level = 10 : i32, message = "chy,cyx->chx"}> : () -> ()
    %cst_10 = arith.constant dense<0.000000e+00> : vector<4x8x8xf32>
    %10 = tpu.matmul %9, %5, %cst_10 {dimension_numbers = #tpu.dot_dimension_numbers<[2], [1], [1], [2], [0, 0, 0, 1, 1, 2], [0], [0]>} : vector<4x8x8xf32>, vector<4x8x8xf32>, vector<4x8x8xf32> -> vector<4x8x8xf32>
    "tpu.trace_stop"() : () -> ()
    %c0_11 = arith.constant 0 : index
    %c0_12 = arith.constant 0 : index
    %11 = vector.load %arg8[%c0_11, %c0_12] : memref<8x16xf32, #tpu.memory_space<vmem>>, vector<8x16xf32>
    %12 = vector.shape_cast %11 : vector<8x16xf32> to vector<1x8x16xf32>
    %13 = vector.shape_cast %12 : vector<1x8x16xf32> to vector<1x8x16xf32>
    %14 = vector.broadcast %13 : vector<1x8x16xf32> to vector<4x8x16xf32>
    "tpu.trace_start"() <{level = 10 : i32, message = "chx,cxw->chw"}> : () -> ()
    %cst_13 = arith.constant dense<0.000000e+00> : vector<4x8x16xf32>
    %15 = tpu.matmul %10, %14, %cst_13 {dimension_numbers = #tpu.dot_dimension_numbers<[2], [1], [1], [2], [0, 0, 0, 1, 1, 2], [0], [0]>} : vector<4x8x8xf32>, vector<4x8x16xf32>, vector<4x8x16xf32> -> vector<4x8x16xf32>
    "tpu.trace_stop"() : () -> ()
    %16 = vector.shape_cast %15 : vector<4x8x16xf32> to vector<4x128xf32>
    %c0_14 = arith.constant 0 : index
    %c0_15 = arith.constant 0 : index
    %17 = vector.load %arg5[%c0_14, %c0_15] : memref<8x4xf32, #tpu.memory_space<vmem>>, vector<8x4xf32>
    %cst_16 = arith.constant dense<0.000000e+00> : vector<8x128xf32>
    %18 = tpu.matmul %17, %16, %cst_16 {dimension_numbers = #tpu.dot_dimension_numbers<[1], [0], [0], [1], [0, 0, 1, 1], [], []>} : vector<8x4xf32>, vector<4x128xf32>, vector<8x128xf32> -> vector<8x128xf32>
    %19 = arith.addf %3, %18 : vector<8x128xf32>
    %c0_17 = arith.constant 0 : index
    %c0_18 = arith.constant 0 : index
    %20 = vector.load %arg6[%c0_17, %c0_18] : memref<8x1xf32, #tpu.memory_space<vmem>>, vector<8x1xf32>
    %21 = vector.broadcast %20 : vector<8x1xf32> to vector<8x128xf32>
    %22 = arith.addf %19, %21 : vector<8x128xf32>
    %c0_19 = arith.constant 0 : index
    %c0_20 = arith.constant 0 : index
    %c0_21 = arith.constant 0 : index
    %23 = vector.load %arg9[%c0_19, %c0_20, %c0_21] : memref<1x8x128xf32, #tpu.memory_space<vmem>>, vector<1x8x128xf32>
    %24 = vector.shape_cast %23 : vector<1x8x128xf32> to vector<8x128xf32>
    %25 = vector.shape_cast %22 : vector<8x128xf32> to vector<1x8x128xf32>
    tpu.vector_store %arg9[%c0_19, %c0_20, %c0_21], %25 {strides = array<i32>} : memref<1x8x128xf32, #tpu.memory_space<vmem>>, vector<1x8x128xf32>,
    return
  }
  func.func @transform_0(%arg0: i32, %arg1: i32) -> (i32, i32, i32) {
    %c0_i32 = arith.constant 0 : i32
    %c0_i32_0 = arith.constant 0 : i32
    return %arg0, %c0_i32, %arg1 : i32, i32, i32
  }
  func.func @transform_1(%arg0: i32, %arg1: i32) -> (i32, i32, i32, i32) {
    %c0_i32 = arith.constant 0 : i32
    %c0_i32_0 = arith.constant 0 : i32
    %c0_i32_1 = arith.constant 0 : i32
    %c0_i32_2 = arith.constant 0 : i32
    return %arg0, %c0_i32, %c0_i32_0, %c0_i32_1 : i32, i32, i32, i32
  }
  func.func @transform_2(%arg0: i32, %arg1: i32) -> (i32, i32) {
    %c0_i32 = arith.constant 0 : i32
    %c0_i32_0 = arith.constant 0 : i32
    %c0_i32_1 = arith.constant 0 : i32
    return %c0_i32, %c0_i32_0 : i32, i32
  }
  func.func @transform_3(%arg0: i32, %arg1: i32) -> (i32, i32) {
    %c0_i32 = arith.constant 0 : i32
    %c0_i32_0 = arith.constant 0 : i32
    %c0_i32_1 = arith.constant 0 : i32
    return %c0_i32, %c0_i32_0 : i32, i32
  }
  func.func @transform_4(%arg0: i32, %arg1: i32) -> (i32, i32) {
    %c0_i32 = arith.constant 0 : i32
    %c0_i32_0 = arith.constant 0 : i32
    %c0_i32_1 = arith.constant 0 : i32
    return %c0_i32, %c0_i32_0 : i32, i32
  }
  func.func @transform_5(%arg0: i32, %arg1: i32) -> (i32, i32) {
    %c0_i32 = arith.constant 0 : i32
    %c0_i32_0 = arith.constant 0 : i32
    return %arg1, %c0_i32 : i32, i32
  }
  func.func @transform_6(%arg0: i32, %arg1: i32) -> (i32, i32) {
    %c0_i32 = arith.constant 0 : i32
    %c0_i32_0 = arith.constant 0 : i32
    %c0_i32_1 = arith.constant 0 : i32
    return %c0_i32, %c0_i32_0 : i32, i32
  }
  func.func @transform_7(%arg0: i32, %arg1: i32) -> (i32, i32, i32) {
    %c0_i32 = arith.constant 0 : i32
    %c0_i32_0 = arith.constant 0 : i32
    return %arg0, %c0_i32, %arg1 : i32, i32, i32
  }
}

</mosaic_0001>

<bundles_post_ra>
// kernel: tpu_custom_call.1
= control target key start
LH: loop header
LB: loop body
LE: loop exit
PB: predicated region body
PF: predicated region fallthrough
CT: control target
= control target key end

     0   :  { %s2020_s0 = inlined_call_operand.vmem [shape: f32[2,4,256], index: 0, kind: input, shape index: {}]   ;;  %s2021_s1 = inlined_call_operand.hbm [shape: f32[2,4,8,8], index: 1, kind: input, shape index: {}]   ;;  %s2022_s2 = inlined_call_operand.vmem [shape: f32[8,4], index: 2, kind: input, shape index: {}]   ;;  %s2023_s3 = inlined_call_operand.vmem [shape: f32[8,4], index: 3, kind: input, shape index: {}]   ;;  %s2024_s4 = inlined_call_operand.vmem [shape: f32[8,1], index: 4, kind: input, shape index: {}]   ;;  %s2025_s5 = inlined_call_operand.vmem [shape: f32[16,8], index: 5, kind: input, shape index: {}]   ;;  %s2026_s6 = inlined_call_operand.vmem [shape: f32[8,16], index: 6, kind: input, shape index: {}]   ;;  %s2027_s7 = inlined_call_operand.hbm [shape: f32[2,8,256], index: 7, kind: output, shape index: {}]  }
   0x1   :  { %2035 = sst [smem:[#allocation13_spill]] %s2020_s0 }
   0x2   :  { %2036 = sst [smem:[#allocation14_spill]] %s2023_s3 }
   0x3   :  { %2037 = sst [smem:[#allocation15_spill]] %s2027_s7 }
   0x4   :  { %12 = vsyncpa [#allocation3], 0 }
   0x5   :  { %14 = vsyncpa [#allocation3 + $0x1], 0 }
   0x6   :  { %15 = vsyncpa [#allocation4], 0 }
   0x7   :  { %17 = vsyncpa [#allocation4 + $0x1], 0  ;;  %s1770_s24 = smov 0   ;;  %s1772_s25 = smov 0  }
   0x8   :  { %s1774_s26 = smov 0   ;;  %s1776_s27 = smov 0  }
   0x9   :  { %s1778_s28 = smov 0   ;;  %s1780_s29 = smov 0  }
   0xa   :  { %s1782_s30 = smov 0   ;;  %s1784_s8 = smov 0  }
   0xb   :  { %s1786_s9 = smov 0   ;;  %s1788_s10 = smov 0  }
   0xc   :  { %s1790_s11 = smov 0  }
   0xd LB: > { %2038 = sst [smem:[#allocation8_spill]] %s1704_s9  ;;  %s1345_s12 = sadd.s32 4294967295, %s1712_s11   ;;  %s1712_s11 = sphi %s1790_s11, %s23_s11   ;;  %s1708_s10 = sphi %s1788_s10, %s2057_s10   ;;  %s1704_s9 = sphi %s1786_s9, %s2056_s9   ;;  %s1700_s8 = sphi %s1784_s8, %s2055_s8   ;;  %s1696_s30 = sphi %s1782_s30, %s2054_s30   ;;  %s1692_s29 = sphi %s1780_s29, %s2063_s29   ;;  %s1688_s28 = sphi %s1778_s28, %s2062_s28   ;;  %s1684_s27 = sphi %s1776_s27, %s2061_s27   ;;  %s1680_s26 = sphi %s1774_s26, %s2060_s26   ;;  %s1676_s25 = sphi %s1772_s25, %s2059_s25   ;;  %s1672_s24 = sphi %s1770_s24, %s2058_s24  }
   0xe   : > { %2039 = sst [smem:[#allocation9_spill]] %s1708_s10  ;;  %s1346_s13 = sadd.s32 4294967294, %s1712_s11  }
   0xf   : > { %s32_s14 = sadd.s32 1, %s1704_s9  ;;  %s35_s15 = sadd.s32 1, %s1708_s10 }
  0x10   : > { %p33_p0 = scmp.ge.s32.totalorder %s32_s14, 2  ;;  %s70_s16 = sadd.s32 1, %s1692_s29 }
  0x11   : > { %p77_p1 = scmp.ne.s32.totalorder %s1692_s29, %s1688_s28  ;;  %p78_p2 = scmp.eq.s32.totalorder %s1712_s11, 0 }
  0x12   : > { %s2065_s14 = smov (%p33_p0, %s32_s14), 0  ;;  %s2067_s15 = smov (!%p33_p0, %s35_s15), %s1708_s10 }
  0x13   : > { %2040 = sst [smem:[#allocation10_spill]] %s2065_s14  ;;  %p1834_p3 = por %p78_p2, %p77_p1 }
  0x14   : > { %p83_p4 = scmp.ne.s32.totalorder %s1688_s28, %s1684_s27  ;;  %p37_p5 = scmp.ge.s32.totalorder %s2067_s15, 2 }
  0x15   : > { %p84_p6 = scmp.eq.s32.totalorder %s1345_s12, 0  ;;  %s204_s18 = ssub.s32 %s1704_s9, %s2065_s14 }
  0x16   : > { %s208_s19 = sadd.s32 1, %s1680_s26  ;;  %s2069_s15 = smov (%p37_p5, %s2067_s15), 0 }
  0x17   : > { %2042 = sst [smem:[#allocation11_spill]] %s2069_s15  ;;  %p1844_p7 = por %p84_p6, %p83_p4 }
  0x18   : > { %p218_p8 = scmp.ne.s32.totalorder %s1680_s26, %s1676_s25  ;;  %s67_s21 = ssub.s32 %s1708_s10, %s2069_s15 }
  0x19   : > { %p219_p9 = scmp.eq.s32.totalorder %s1345_s12, 3  ;;  %p68_p10 = scmp.eq.s32.totalorder %s67_s21, 0 }
  0x1a   : > { %s205_s22 = sor.u32 %s204_s18, %s67_s21  ;;  %p224_p13 = scmp.ne.s32.totalorder %s1676_s25, %s1672_s24 }
  0x1b   : > { %p206_p11 = scmp.eq.s32.totalorder %s205_s22, 0  ;;  %p1852_p12 = por %p219_p9, %p218_p8 }
  0x1c   : > { %s1857_s27 = scalar_select %p68_p10, %s1692_s29, %s70_s16  }
  0x1d   : > { %s2044_s23 = scalar_select %p1852_p12, 1, 0 }
  0x1e   : > { %s1860_s14 = scalar_select %p206_p11, %s1680_s26, %s208_s19  }
  0x1f   : > { %2045 = sst [smem:[#allocation12_spill]] %s2044_s23  ;;  %p225_p0 = scmp.eq.s32.totalorder %s1346_s13, 3 }
  0x20   : > { %p1458_p1 = scmp.lt.s32.totalorder %s1712_s11, 4  ;;  %s268_s12 = sand.u32 1, %s1692_s29  }
  0x21   : > { %p1865_p2 = por %p225_p0, %p224_p13  ;;  %s1349_s18 = sshll.u32 %s268_s12, 5 }
  0x22   : > { %s1375_s21 = sshll.u32 %s1708_s10, 9  ;;  %s272_s3 = scalar_lea.vmem [#allocation2], %s1349_s18 }
  0x23   : > { %s278_s7 = scalar_lea.hbm %s2021_s1, %s1375_s21  ;;  %s279_s23 = sshll.u32 %s272_s3, 4  ;;  %s280_s23 = int_to_ptr.vmem [resolvable:$true] %s279_s23 }
  0x24   : > { %p1876_p4 = pnand %p1458_p1, %p1834_p3  ;;  %p1352_p5 = scmp.ge.s32.totalorder %s1712_s11, 1 }
  0x25   : > { %s269_s13 = scalar_lea.sflag [#allocation3], %s268_s12  ;;  %s1577_s19 = scalar_lea.vmem %s280_s23, 512 }
  0x26   : > { %p1566_p6 = pneg %p1876_p4  ;;  %p1578_p8 = scmp.ne.s32.totalorder %s280_s23, %s1577_s19 }
  0x27   : > { %s1714_s10 = smov [#allocation2]  }
  0x28   : > { %p1580_p9 = pnand %p1578_p8, %p1566_p6  ;;  %s1582_s15 = sshll.u32 %s1714_s10, 4  ;;  %s1583_s15 = int_to_ptr.vmem [resolvable:$false] %s1582_s15 }
  0x29   : > { %s1584_s18 = scalar_lea.vmem %s1583_s15, 1024  ;;  %p1585_p11 = scmp.lt.s32.totalorder %s280_s23, %s1583_s15 }
  0x2a   : > { %p1581_p10 = pneg %p1580_p9  ;;  %p1586_p13 = scmp.lt.s32.totalorder %s1584_s18, %s1577_s19 }
  0x2c   : > { %p1587_p0 = por %p1586_p13, %p1585_p11 }
  0x2e   : > { %p1588_p3 = pnand %p1587_p0, %p1581_p10 }
  0x30   : > { %1591 = shalt.err (!%p1588_p3)
}
  0x31   : > { %s1715_s3 = smov 128   ;;  %s1716_s17 = smov 8  }
  0x32   : > { %1453 = dma.hbm_to_vmem [thread:$0]  (!%p1876_p4), %s278_s7, 512, %s280_s23, %s269_s13, %s1715_s3, %s1715_s3, %s1716_s17  }
  0x33   : > { %p294_p1 = scmp.lt.s32.totalorder %s1712_s11, 5 }
  0x35   : > { %p295_p6 = pnand %p1352_p5, %p294_p1 }
  0x36   : > { %s300_s10 = sand.u32 (!%p295_p6), 1, %s1688_s28  }
  0x37   : > { %298 = sbr.rel (%p295_p6) target bundleno = 805 (0x325), region = 48  ;;  %s1353_s12 = sshll.u32 (!%p295_p6), %s300_s10, 5 }
  0x38   : > { %s301_s21 = scalar_lea.sflag (!%p295_p6), [#allocation3], %s300_s10  ;;  %s304_s22 = scalar_lea.vmem (!%p295_p6), [#allocation2], %s1353_s12 }
  0x3c   : > { %1663 = dma.done.wait (%p1844_p7), %s301_s21, 512  }
  0x3d   : > { %1665 = vsyncadd (%p1844_p7), %s301_s21, 4294966784  ;;  %p349_p8 = scmp.lt.s32.totalorder %s1696_s30, 1  ;;  %v1717_v0 = vmov 0.0   ;;  %vm1718_vm0 = vmmov 0   ;;  %vm366_vm1 = vcmask 64512   ;;  %v361_v1 = vld [vmem:[%s304_s22] sm:$0xff]  ;;  %v948_v17 = vlaneseq }
  0x3e   : > { %1396 = vmatprep.subr.mxu0 %v1717_v0  ;;  %1401 = vmatprep.subr.mxu1 %v1717_v0  ;;  %v362_v2 = vld [vmem:[%s304_s22 + $0x8] sm:$0xff]  ;;  %v363_v4 = vld [vmem:[%s304_s22 + $0x10] sm:$0xff]  ;;  %v364_v5 = vld [vmem:[%s304_s22 + $0x18] sm:$0xff]  ;;  %v1719_v15 = vmov 1983009808   ;;  %p347_p7 = scmp.lt.s32.totalorder %s1700_s8, 1 }
  0x3f   : > { %1398 = vmatprep.mubr.msk.f32.mxu0 %vm1718_vm0, %v1717_v0  ;;  %1403 = vmatprep.mubr.msk.f32.mxu1 %vm1718_vm0, %v1717_v0  ;;  %s1901_s7 = scalar_select %p349_p8, %s1696_s30, 1  ;;  %v650_v6 = vld [vmem:[%s2026_s6] sm:$0xff]  ;;  %v946_v16 = vunpack.c.l.s4 %v1719_v15  ;;  %v1720_v18 = vmov 1934713408   ;;  %v949_v21 = vshrl.u32 %v948_v17, 7  ;;  %vm1058_vm2 = vcmask 1043456  }
  0x40   : > { %1397 = vmatpush3.msra.mxu0 %v361_v1  ;;  %1402 = vmatpush3.msra.mxu1 %v362_v2  ;;  %v978_v19 = vunpack.c.l.s4 %v1720_v18  ;;  %s348_s18 = scalar_select %p347_p7, %s1700_s8, 1  ;;  %vm1054_vm3 = vcmask 31744   ;;  %v359_v48 = vld [vmem:[%s2022_s2] sm:$0xff]  ;;  %v1723_v52 = vmov 0   ;;  %vm1039_vm4 = vcmask 130048  }
  0x41   : > { %s1357_s20 = sshll.u32 %s1901_s7, 3  ;;  %1406 = vmatprep.subr.mxu0 %v1717_v0  ;;  %1411 = vmatprep.subr.mxu1 %v1717_v0  ;;  %v947_v20 = vunpack.c.0.s8 %v946_v16  ;;  %s2048_s0 = sld [smem:[#allocation13_spill]]  ;;  %v1208_v55 = vld [vmem:[%s2024_s4] sm:$0xff]  ;;  %vm1041_vm5 = vcmask 261120   ;;  %vm1043_vm6 = vcmask 392192   ;;  %vm1045_vm7 = vcmask 523264  }
  0x42   : > { %s358_s13 = scalar_lea.vmem %s2025_s5, %s1357_s20  ;;  %v979_v26 = vunpack.c.0.s8 %v978_v19  ;;  %s1355_s3 = sshll.u32 %s348_s18, 1  ;;  %1562 = vset.pattern.permute.xlu1 %v1723_v52  ;;  %1563 = vset.pattern.permute.xlu0 %v1723_v52  ;;  %vm1047_vm8 = vcmask 654336   ;;  %vm1049_vm9 = vcmask 785408   ;;  %vm1051_vm10 = vcmask 916480  }
  0x43   : > { %v365_v3 = vld [vmem:[%s358_s13] sm:$0xff]  ;;  %v950_v27 = vsub.s32 %v947_v20, %v949_v21  ;;  %s352_s17 = sadd.s32 %s1355_s3, %s1901_s7  ;;  %s1721_s16 = smov 64  }
  0x44   : > { %1399 = vmatmul.mubr.msk.f32.vlgmr.msra.gmra.mxu0 %vm366_vm1, %v365_v3  ;;  %1404 = vmatmul.mubr.msk.f32.vlgmr.msra.gmra.mxu1 %vm366_vm1, %v365_v3  ;;  %v982_v36 = vsub.s32 %v979_v26, %v949_v21  ;;  %s1356_s10 = sshll.u32 %s352_s17, 2  ;;  %s1722_s7 = smov 32  }
  0x45   : > { %1407 = vmatpush3.msra.mxu0 %v363_v4  ;;  %1408 = vmatprep.mubr.msk.f32.mxu0 %vm1718_vm0, %v1717_v0  ;;  %s1724_s13 = smov 48   ;;  %s1725_s19 = smov 16  }
  0x46   : > { %1412 = vmatpush3.msra.mxu1 %v364_v5  ;;  %1413 = vmatprep.mubr.msk.f32.mxu1 %vm1718_vm0, %v1717_v0  ;;  %s1726_s15 = smov 96   ;;  %s1727_s18 = smov 80  }
  0x47   : > { %1416 = vmatprep.subr.mxu0 %v1717_v0  ;;  %1421 = vmatprep.subr.mxu1 %v1717_v0  ;;  %s354_s22 = scalar_lea.vmem %s2048_s0, %s1356_s10  ;;  %s1728_s10 = smov 112  }
  0x48   : > { %1409 = vmatmul.mubr.msk.f32.vlgmr.msra.gmra.mxu0 %vm366_vm1, %v365_v3  ;;  %1414 = vmatmul.mubr.msk.f32.vlgmr.msra.gmra.mxu1 %vm366_vm1, %v365_v3  ;;  %v360_v47 = vld [vmem:[%s354_s22] sm:$0xf]  ;;  %s2049_s22 = sld [smem:[#allocation14_spill]]  ;;  %s344_s20 = sand.u32 1, %s1676_s25  }
  0x49   : > { %1418 = vmatprep.mubr.msk.f32.mxu0 %vm1718_vm0, %v1717_v0  ;;  %1423 = vmatprep.mubr.msk.f32.mxu1 %vm1718_vm0, %v1717_v0  ;;  %s1354_s23 = sshll.u32 %s344_s20, 3 }
  0x4a   : > { %1417 = vmatpush3.msra.mxu0 %v650_v6  ;;  %1422 = vmatpush3.msra.mxu1 %v650_v6 }
  0x4b   : > { %1426 = vmatprep.subr.mxu0 %v1717_v0  ;;  %1431 = vmatprep.subr.mxu1 %v1717_v0 }
 0x104   : > { %v436_v7 = vpop.f32.mrf.mxu0  ;;  %v506_v8 = vpop.f32.mrf.mxu1 }
 0x105   : > { %1419 = vmatmul.mubr.msk.f32.vlgmr.msra.gmra.mxu0 %vm366_vm1, %v436_v7  ;;  %1424 = vmatmul.mubr.msk.f32.vlgmr.msra.gmra.mxu1 %vm366_vm1, %v506_v8 }
 0x106   : > { %v1400_v9 = vpop.f32.mrf.mxu0  ;;  %v1405_v10 = vpop.f32.mrf.mxu1  ;;  %1427 = vmatpush3.msra.mxu0 %v650_v6  ;;  %1428 = vmatprep.mubr.msk.f32.mxu0 %vm1718_vm0, %v1717_v0 }
 0x107   : > { %1432 = vmatpush3.msra.mxu1 %v650_v6  ;;  %1433 = vmatprep.mubr.msk.f32.mxu1 %vm1718_vm0, %v1717_v0  ;;  %v1053_v6 = vld [vmem:[%s2049_s22] sm:$0xff]  ;;  %s1217_s22 = scalar_lea.sflag [#allocation4], %s344_s20 }
 0x108   : > { %v576_v11 = vpop.f32.mrf.mxu0  ;;  %v646_v12 = vpop.f32.mrf.mxu1  ;;  %1436 = vmatprep.subr.mxu0 %v1717_v0  ;;  %1441 = vmatprep.subr.mxu1 %v1717_v0 }
 0x109   : > { %1429 = vmatmul.mubr.msk.f32.vlgmr.msra.gmra.mxu0 %vm366_vm1, %v576_v11  ;;  %1434 = vmatmul.mubr.msk.f32.vlgmr.msra.gmra.mxu1 %vm366_vm1, %v646_v12 }
 0x10a   : > { %v1410_v13 = vpop.f32.mrf.mxu0  ;;  %v1415_v14 = vpop.f32.mrf.mxu1  ;;  %1438 = vmatprep.mubr.msk.f32.mxu0 %vm1718_vm0, %v1717_v0  ;;  %1443 = vmatprep.mubr.msk.f32.mxu1 %vm1718_vm0, %v1717_v0 }
 0x10b   : > { %1442 = vmatpush3.msk.msra.mxu1 %vm1058_vm2, %v360_v47 }
 0x10d   : > { %1444 = vmatmul.mubr.msk.f32.vlgmr.msra.gmra.mxu1 %vm1054_vm3, %v359_v48 }
 0x1c5   : > { %v720_v22 = vpop.f32.mrf.mxu0  ;;  %v793_v23 = vpop.f32.mrf.mxu1 }
 0x1c7   : > { %v1420_v24 = vpop.f32.mrf.mxu0  ;;  %v1425_v25 = vpop.f32.mrf.mxu1 }
 0x1c9   : > { %v866_v28 = vpop.f32.mrf.mxu0  ;;  %v939_v29 = vpop.f32.mrf.mxu1 }
 0x1ca   : > { %v943_v30 = vcombine.low %v720_v22, %v866_v28  ;;  %v944_v31 = vcombine.high %v720_v22, %v866_v28  ;;  %v959_v32 = vcombine.low %v793_v23, %v939_v29  ;;  %v960_v33 = vcombine.high %v793_v23, %v939_v29 }
 0x1cb   : > { %v1430_v34 = vpop.f32.mrf.mxu0  ;;  %v1435_v35 = vpop.f32.mrf.mxu1 }
 0x1cc   : > { %v951_v37 = vrot.slane %v943_v30, %v950_v27  ;;  %v958_v38 = vrot.slane %v944_v31, %v950_v27  ;;  %v967_v39 = vrot.slane %v959_v32, %v950_v27  ;;  %v974_v40 = vrot.slane %v960_v33, %v950_v27 }
 0x1cd   : > { %v1204_v8 = vpop.f32.mrf.mxu1 }
 0x1ce   : > { %v975_v41 = vcombine.low %v951_v37, %v967_v39  ;;  %v991_v42 = vcombine.low %v958_v38, %v974_v40  ;;  %v976_v43 = vcombine.high %v951_v37, %v967_v39  ;;  %v992_v49 = vcombine.high %v958_v38, %v974_v40 }
 0x1cf   : > { %v1445_v9 = vpop.f32.mrf.mxu1 }
 0x1d0   : > { %v999_v44 = vrot.slane %v991_v42, %v982_v36  ;;  %v990_v45 = vrot.slane %v976_v43, %v982_v36  ;;  %v983_v46 = vrot.slane %v975_v41, %v982_v36  ;;  %v1006_v54 = vrot.slane %v992_v49, %v982_v36 }
 0x1d2   : > { %1024 = vrot.lane.b32.xlu1 %v999_v44, %s1721_s16  ;;  %1016 = vrot.lane.b32.xlu0 %v990_v45, %s1722_s7  ;;  %v1008_v50 = vcombine.high %v990_v45, %v1717_v0  ;;  %v1007_v51 = vcombine.high %v983_v46, %v1717_v0  ;;  %v1009_v53 = vcombine.high %v999_v44, %v1717_v0  ;;  %s1371_s16 = sshll.u32 %s1700_s8, 1 }
 0x1d3   : > { %v1010_v56 = vcombine.high %v1006_v54, %v1717_v0 }
 0x1d6   : > { %1020 = vrot.lane.b32.xlu1 %v1008_v50, %s1724_s13  ;;  %1012 = vrot.lane.b32.xlu0 %v1007_v51, %s1725_s19  ;;  %s1228_s13 = sadd.s32 %s1696_s30, %s1371_s16  ;;  %s1729_s30 = smov [#allocation5]  }
 0x1d7   : > { %s1372_s19 = sshll.u32 %s1228_s13, 7  ;;  %s1596_s8 = sshll.u32 %s1729_s30, 4  ;;  %s1597_s8 = int_to_ptr.vmem [resolvable:$false] %s1596_s8 }
 0x1da   : > { %1032 = vrot.lane.b32.xlu1 %v1006_v54, %s1726_s15  ;;  %1028 = vrot.lane.b32.xlu0 %v1009_v53, %s1727_s18  ;;  %s346_s15 = scalar_lea.vmem [#allocation5], %s1354_s23  ;;  %s1598_s23 = scalar_lea.vmem %s1597_s8, 256 }
 0x1db   : > { %s1232_s18 = sshll.u32 %s346_s15, 4  ;;  %s1233_s18 = int_to_ptr.vmem [resolvable:$true] %s1232_s18 }
 0x1dc   : > { %s1592_s0 = scalar_lea.vmem %s1233_s18, 128  ;;  %p1599_p10 = scmp.lt.s32.totalorder %s1233_s18, %s1597_s8 }
 0x1dd   : > { %p1593_p4 = scmp.ne.s32.totalorder %s1233_s18, %s1592_s0  ;;  %p1600_p11 = scmp.lt.s32.totalorder %s1598_s23, %s1592_s0 }
 0x1de   : > { %1036 = vrot.lane.b32.xlu0 %v1010_v56, %s1728_s10  ;;  %1211 = vperm.xlu1 %1562, %v1208_v55   ;;  %s2051_s10 = sld [smem:[#allocation15_spill]] }
 0x1df   : > { %p1594_p5 = pnand %p1593_p4, %p1852_p12  ;;  %p1601_p13 = por %p1600_p11, %p1599_p10 }
 0x1e1   : > { %p1595_p9 = pneg %p1594_p5 }
 0x1e3   : > { %p1602_p0 = pnand %p1601_p13, %p1595_p9 }
 0x1e4   : > { %s2052_s12 = smov %s2051_s10  ;;  %s1230_s21 = scalar_lea.hbm %s2051_s10, %s1372_s19 }
 0x244   : > { %v1025_v57 = vpop.permute.xlu1 %1024  ;;  %v1017_v58 = vpop.permute.xlu0 %1016 }
 0x248   : > { %v1021_v59 = vpop.permute.xlu1 %1020  ;;  %v1013_v60 = vpop.permute.xlu0 %1012 }
 0x249   : > { %v1040_v61 = vsel %vm1039_vm4, %v983_v46, %v1013_v60 }
 0x24a   : > { %v1042_v62 = vsel %vm1041_vm5, %v1040_v61, %v1017_v58 }
 0x24b   : > { %v1044_v63 = vsel %vm1043_vm6, %v1042_v62, %v1021_v59 }
 0x24c   : > { %v1046_v1 = vsel %vm1045_vm7, %v1044_v63, %v1025_v57  ;;  %v1029_v2 = vpop.permute.xlu0 %1028  ;;  %v1033_v0 = vpop.permute.xlu1 %1032 }
 0x24d   : > { %v1048_v3 = vsel %vm1047_vm8, %v1046_v1, %v1029_v2 }
 0x24e   : > { %v1050_v4 = vsel %vm1049_vm9, %v1048_v3, %v1033_v0 }
 0x250   : > { %v1037_v5 = vpop.permute.xlu0 %1036 }
 0x251   : > { %v1052_v7 = vsel %vm1051_vm10, %v1050_v4, %v1037_v5 }
 0x252   : > { %1437 = vmatpush3.msk.msra.mxu0 %vm1058_vm2, %v1052_v7 }
 0x253   : > { %1439 = vmatmul.mubr.msk.f32.vlgmr.msra.gmra.mxu0 %vm1054_vm3, %v1053_v6 }
 0x259   : > { %v1212_v11 = vpop.permute.xlu1 %1211 }
 0x313   : > { %v1128_v10 = vpop.f32.mrf.mxu0 }
 0x314   : > { %v1205_v12 = vadd.f32 %v1204_v8, %v1128_v10 }
 0x315   : > { %v1440_v13 = vpop.f32.mrf.mxu0 }
 0x316   : > { %v1214_v14 = vadd.f32 %v1212_v11, %v1205_v12 }
 0x318   : > { %1215 = vst [vmem:[%s346_s15] sm:$0xff] %v1214_v14 }
 0x319   : > { %1605 = shalt.err (!%p1602_p0)
}
 0x31a   : > { %s1606_s16 = scalar_lea.hbm %s1230_s21, 128  ;;  %s1610_s19 = scalar_lea.hbm %s2052_s12, 512 }
 0x31b   : > { %p1607_p3 = scmp.ne.s32.totalorder %s1230_s21, %s1606_s16  ;;  %p1611_p8 = scmp.lt.s32.totalorder %s1230_s21, %s2052_s12 }
 0x31c   : > { %p1612_p7 = scmp.lt.s32.totalorder %s1610_s19, %s1606_s16 }
 0x31d   : > { %p1608_p1 = pnand %p1607_p3, %p1852_p12 }
 0x31e   : > { %p1613_p4 = por %p1612_p7, %p1611_p8 }
 0x31f   : > { %p1609_p6 = pneg %p1608_p1 }
 0x321   : > { %p1614_p5 = pnand %p1613_p4, %p1609_p6 }
 0x323   : > { %1617 = shalt.err (!%p1614_p5)
}
 0x324   : > { %1448 = dma.vmem_to_hbm [thread:$0]  (%p1852_p12), %s1233_s18, 128, %s1230_s21, %s1217_s22  }
 0x325 PF: > { %p1459_p9 = scmp.ge.s32.totalorder %s1712_s11, 2  ;;  %s1244_s0 = sand.u32 1, %s1672_s24  }
 0x326   : > { %s1245_s17 = scalar_lea.sflag [#allocation4], %s1244_s0 }
 0x327   : > { %p1455_p10 = pnand %p1459_p9, %p1865_p2 }
 0x329   : > { %p1456_p11 = pneg %p1455_p10 }
 0x32b   : > { %1667 = dma.done.wait (%p1456_p11), %s1245_s17, 128  }
 0x32c   : > { %1669 = vsyncadd (%p1456_p11), %s1245_s17, 4294967168  ;;  %s23_s11 = sadd.s32 1, %s1712_s11   ;;  %s2053_s7 = smov %s1857_s27 }
 0x32d   : > { %p20_p13 = scmp.ge.s32.totalorder %s23_s11, 6   ;;  %s2054_s30 = sld [smem:[#allocation8_spill]] }
 0x32e   : > { %s2055_s8 = sld [smem:[#allocation9_spill]]  ;;  %s2058_s24 = smov %s1676_s25 }
 0x32f   : > { %s2056_s9 = sld [smem:[#allocation10_spill]]  ;;  %s2059_s25 = smov %s1680_s26 }
 0x330   : > { %s2057_s10 = sld [smem:[#allocation11_spill]]  ;;  %s2060_s26 = smov %s1860_s14 }
 0x331   : > { %s2061_s27 = smov %s1688_s28  ;;  %s2062_s28 = smov %s1692_s29 }
 0x332   : > { %s2063_s29 = smov %s2053_s7  ;;  %22 = sbr.rel (!%p20_p13) target bundleno = 13 (0xd), region = 99 }
 0x337   :  { %1250 = vsyncpa [#allocation3], 1 }
 0x338   :  { %1252 = vsyncpa [#allocation3 + $0x1], 1 }
 0x339   :  { %1253 = vsyncpa [#allocation4], 1 }
 0x33a   :  { %1255 = vsyncpa [#allocation4 + $0x1], 1 }

</bundles_post_ra>
